<compile_context>
chip_gen: v7x
topology: tpu7x:2x2x1
jax: 0.10.0
libtpu: 0.0.40
codegen_flags: <defaults>
</compile_context>

<pallas_src>
import functools

import jax
import jax.numpy as jnp
from jax.experimental import pallas as pl
from jax.experimental.pallas import tpu as pltpu


LANE = 128      # lane width / MXU tile edge (same on v5e/v6e/v7x)
SUBLANE = 8     # f32 sublane count per vreg


def _round_up(x, m):
    return ((x + m - 1) // m) * m


def mlp_kernel(x_ref, w1_ref, b1_ref, w2_ref, b2_ref, o_ref):
    # fc1: (TB, In_p) @ (In_p, H_p) + b1   -- b1 is already (TB, H_p), full-vreg add
    h = jnp.dot(x_ref[...], w1_ref[...], preferred_element_type=jnp.float32)
    h = h + b1_ref[...]
    # ReLU
    h = jnp.maximum(h, 0.0)
    # out: (TB, H_p) @ (H_p, O_p) + b2     -- b2 is already (TB, O_p)
    y = jnp.dot(h.astype(w2_ref.dtype), w2_ref[...],
                preferred_element_type=jnp.float32)
    y = y + b2_ref[...]
    o_ref[...] = y.astype(o_ref.dtype)


@functools.partial(jax.jit, static_argnames=("compute_dtype",))
def mlp_forward(x, w1, b1, w2, b2, compute_dtype=jnp.float32):
    """x: (B, In); w1: (In, H); b1: (H,) or (1, H); w2: (H, O); b2: (O,) or (1, O)."""
    B, In = x.shape
    H = w1.shape[1]
    O = w2.shape[1]

    # Padded, lane-dense shapes.
    In_p = _round_up(In, LANE)
    H_p = _round_up(H, LANE)
    O_p = _round_up(O, LANE)

    # Batch tile: at least one sublane group, at most 128 rows per grid step.
    TB = min(LANE, _round_up(B, SUBLANE))
    B_p = _round_up(B, TB)
    grid = (B_p // TB,)

    cd = compute_dtype
    xp = jnp.pad(x, ((0, B_p - B), (0, In_p - In))).astype(cd)
    w1p = jnp.pad(w1, ((0, In_p - In), (0, H_p - H))).astype(cd)
    w2p = jnp.pad(w2, ((0, H_p - H), (0, O_p - O))).astype(cd)
    # Pre-broadcast biases to full (TB, padded) tiles -> plain full-vreg adds.
    b1p = jnp.broadcast_to(
        jnp.pad(b1.reshape(1, H), ((0, 0), (0, H_p - H))), (TB, H_p)
    ).astype(jnp.float32)
    b2p = jnp.broadcast_to(
        jnp.pad(b2.reshape(1, O), ((0, 0), (0, O_p - O))), (TB, O_p)
    ).astype(jnp.float32)

    out_p = pl.pallas_call(
        mlp_kernel,
        out_shape=jax.ShapeDtypeStruct((B_p, O_p), x.dtype),
        grid_spec=pltpu.PrefetchScalarGridSpec(
            num_scalar_prefetch=0,
            grid=grid,
            in_specs=[
                pl.BlockSpec((TB, In_p), lambda i: (i, 0)),   # x tile over batch
                pl.BlockSpec((In_p, H_p), lambda i: (0, 0)),  # w1 resident
                pl.BlockSpec((TB, H_p), lambda i: (0, 0)),    # b1 (broadcast tile)
                pl.BlockSpec((H_p, O_p), lambda i: (0, 0)),   # w2 resident
                pl.BlockSpec((TB, O_p), lambda i: (0, 0)),    # b2 (broadcast tile)
            ],
            out_specs=pl.BlockSpec((TB, O_p), lambda i: (i, 0)),
        ),
        compiler_params=pltpu.CompilerParams(
            dimension_semantics=("parallel",),      # use both TCs on v7x
            vmem_limit_bytes=32 * 1024 * 1024,      # headroom on v7x's 64 MiB VMEM
        ),
    )(xp, w1p, b1p, w2p, b2p)

    # Slice the zero-padding away outside the kernel.
    return out_p[:B, :O]


def init_params(key, input_size, hidden_size, output_size):
    # Deterministic init mimicking nn.Linear's uniform(-1/sqrt(fan_in), 1/sqrt(fan_in)).
    # Weights stored transposed relative to PyTorch: (in_features, out_features).
    k1, k2, k3, k4 = jax.random.split(key, 4)
    bound1 = 1.0 / jnp.sqrt(input_size)
    bound2 = 1.0 / jnp.sqrt(hidden_size)
    w1 = jax.random.uniform(k1, (input_size, hidden_size), jnp.float32, -bound1, bound1)
    b1 = jax.random.uniform(k2, (hidden_size,), jnp.float32, -bound1, bound1)
    w2 = jax.random.uniform(k3, (hidden_size, output_size), jnp.float32, -bound2, bound2)
    b2 = jax.random.uniform(k4, (output_size,), jnp.float32, -bound2, bound2)
    return w1, b1, w2, b2


if __name__ == "__main__":
    input_size, hidden_size, output_size = 32, 64, 16
    batch = 8

    key = jax.random.PRNGKey(0)
    kx, kp = jax.random.split(key)
    x = jax.random.normal(kx, (batch, input_size), jnp.float32)
    w1, b1, w2, b2 = init_params(kp, input_size, hidden_size, output_size)

    out = mlp_forward(x, w1, b1, w2, b2)
    jax.block_until_ready(out)

    # Reference check in plain JAX (same math as the PyTorch forward).
    ref = jnp.maximum(x @ w1 + b1[None, :], 0.0) @ w2 + b2[None, :]
    assert out.shape == (batch, output_size)
    assert jnp.allclose(out, ref, atol=1e-5, rtol=1e-5)

    print("KERNEL_OK")
</pallas_src>

<mosaic_0001>
module attributes {stable_mosaic.version = 11 : i64} {
  func.func @mlp_kernel(%arg0: i32, %arg1: memref<8x128xf32, #tpu.memory_space<vmem>>, %arg2: memref<128x128xf32, #tpu.memory_space<vmem>>, %arg3: memref<8x128xf32, #tpu.memory_space<vmem>>, %arg4: memref<128x128xf32, #tpu.memory_space<vmem>>, %arg5: memref<8x128xf32, #tpu.memory_space<vmem>>, %arg6: memref<8x128xf32, #tpu.memory_space<vmem>>) attributes {dimension_semantics = [#tpu.dimension_semantics<parallel>], iteration_bounds = array<i64: 1>, scalar_prefetch = 0 : i64, scratch_operands = 0 : i64, tpu.core_type = #tpu.core_type<tc>, window_params = [{transform_indices = @transform_0, window_bounds = array<i64: 8, 128>}, {pipeline_mode = #tpu.pipeline_mode<synchronous>, transform_indices = @transform_1, window_bounds = array<i64: 128, 128>}, {pipeline_mode = #tpu.pipeline_mode<synchronous>, transform_indices = @transform_2, window_bounds = array<i64: 8, 128>}, {pipeline_mode = #tpu.pipeline_mode<synchronous>, transform_indices = @transform_3, window_bounds = array<i64: 128, 128>}, {pipeline_mode = #tpu.pipeline_mode<synchronous>, transform_indices = @transform_4, window_bounds = array<i64: 8, 128>}, {transform_indices = @transform_5, window_bounds = array<i64: 8, 128>}]} {
    %c0 = arith.constant 0 : index
    %c0_0 = arith.constant 0 : index
    %0 = vector.load %arg1[%c0, %c0_0] : memref<8x128xf32, #tpu.memory_space<vmem>>, vector<8x128xf32>
    %c0_1 = arith.constant 0 : index
    %c0_2 = arith.constant 0 : index
    %1 = vector.load %arg2[%c0_1, %c0_2] : memref<128x128xf32, #tpu.memory_space<vmem>>, vector<128x128xf32>
    %cst = arith.constant dense<0.000000e+00> : vector<8x128xf32>
    %2 = tpu.matmul %0, %1, %cst {dimension_numbers = #tpu.dot_dimension_numbers<[1], [0], [0], [1], [0, 0, 1, 1], [], []>} : vector<8x128xf32>, vector<128x128xf32>, vector<8x128xf32> -> vector<8x128xf32>
    %c0_3 = arith.constant 0 : index
    %c0_4 = arith.constant 0 : index
    %3 = vector.load %arg3[%c0_3, %c0_4] : memref<8x128xf32, #tpu.memory_space<vmem>>, vector<8x128xf32>
    %4 = arith.addf %2, %3 : vector<8x128xf32>
    %cst_5 = arith.constant 0.000000e+00 : f32
    %5 = vector.broadcast %cst_5 : f32 to vector<8x128xf32>
    %6 = arith.maximumf %4, %5 : vector<8x128xf32>
    %c0_6 = arith.constant 0 : index
    %c0_7 = arith.constant 0 : index
    %7 = vector.load %arg4[%c0_6, %c0_7] : memref<128x128xf32, #tpu.memory_space<vmem>>, vector<128x128xf32>
    %cst_8 = arith.constant dense<0.000000e+00> : vector<8x128xf32>
    %8 = tpu.matmul %6, %7, %cst_8 {dimension_numbers = #tpu.dot_dimension_numbers<[1], [0], [0], [1], [0, 0, 1, 1], [], []>} : vector<8x128xf32>, vector<128x128xf32>, vector<8x128xf32> -> vector<8x128xf32>
    %c0_9 = arith.constant 0 : index
    %c0_10 = arith.constant 0 : index
    %9 = vector.load %arg5[%c0_9, %c0_10] : memref<8x128xf32, #tpu.memory_space<vmem>>, vector<8x128xf32>
    %10 = arith.addf %8, %9 : vector<8x128xf32>
    %c0_11 = arith.constant 0 : index
    %c0_12 = arith.constant 0 : index
    %11 = vector.load %arg6[%c0_11, %c0_12] : memref<8x128xf32, #tpu.memory_space<vmem>>, vector<8x128xf32>
    tpu.vector_store %arg6[%c0_11, %c0_12], %10 {strides = array<i32>} : memref<8x128xf32, #tpu.memory_space<vmem>>, vector<8x128xf32>,
    return
  }
  func.func @transform_0(%arg0: i32) -> (i32, i32) {
    %c0_i32 = arith.constant 0 : i32
    %c0_i32_0 = arith.constant 0 : i32
    return %arg0, %c0_i32 : i32, i32
  }
  func.func @transform_1(%arg0: i32) -> (i32, i32) {
    %c0_i32 = arith.constant 0 : i32
    %c0_i32_0 = arith.constant 0 : i32
    %c0_i32_1 = arith.constant 0 : i32
    return %c0_i32, %c0_i32_0 : i32, i32
  }
  func.func @transform_2(%arg0: i32) -> (i32, i32) {
    %c0_i32 = arith.constant 0 : i32
    %c0_i32_0 = arith.constant 0 : i32
    %c0_i32_1 = arith.constant 0 : i32
    return %c0_i32, %c0_i32_0 : i32, i32
  }
  func.func @transform_3(%arg0: i32) -> (i32, i32) {
    %c0_i32 = arith.constant 0 : i32
    %c0_i32_0 = arith.constant 0 : i32
    %c0_i32_1 = arith.constant 0 : i32
    return %c0_i32, %c0_i32_0 : i32, i32
  }
  func.func @transform_4(%arg0: i32) -> (i32, i32) {
    %c0_i32 = arith.constant 0 : i32
    %c0_i32_0 = arith.constant 0 : i32
    %c0_i32_1 = arith.constant 0 : i32
    return %c0_i32, %c0_i32_0 : i32, i32
  }
  func.func @transform_5(%arg0: i32) -> (i32, i32) {
    %c0_i32 = arith.constant 0 : i32
    %c0_i32_0 = arith.constant 0 : i32
    return %arg0, %c0_i32 : i32, i32
  }
}

</mosaic_0001>

<bundles_post_ra>
// kernel: mlp_forward.1
= control target key start
LH: loop header
LB: loop body
LE: loop exit
PB: predicated region body
PF: predicated region fallthrough
CT: control target
= control target key end

     0   :  { %v392_v3 = vmov 0.0|0.0   ;;  %vm393_vm0 = vmmov 0   ;;  %v394_v6 = vmov 0.0   ;;  %s559_s0 = inlined_call_operand.vmem [shape: f32[8,128], index: 0, kind: input, shape index: {}]   ;;  %s560_s1 = inlined_call_operand.vmem [shape: f32[128,128], index: 1, kind: input, shape index: {}]   ;;  %s561_s2 = inlined_call_operand.vmem [shape: f32[8,128], index: 2, kind: input, shape index: {}]   ;;  %s562_s3 = inlined_call_operand.vmem [shape: f32[128,128], index: 3, kind: input, shape index: {}]   ;;  %s563_s4 = inlined_call_operand.vmem [shape: f32[8,128], index: 4, kind: input, shape index: {}]   ;;  %s564_s5 = inlined_call_operand.hbm [shape: f32[8,128], index: 5, kind: output, shape index: {}]  }
   0x1   :  { %v22_v0 = vld [vmem:[%s560_s1] sm:$0xff]  ;;  %v23_v1 = vld [vmem:[%s560_s1 + $0x8] sm:$0xff]  ;;  %v24_v2 = vld [vmem:[%s560_s1 + $0x10] sm:$0xff]  ;;  %316 = vmatprep.subr.bf16.mxu0 %v392_v3  ;;  %278 = vmatprep.mubr.msk.f32.mxu0 %vm393_vm0, %v394_v6 }
   0x2   :  { %v317_v4 = vpack.c.bf16 %v23_v1, %v22_v0  ;;  %v25_v5 = vld [vmem:[%s560_s1 + $0x18] sm:$0xff]  ;;  %340 = vmatprep.subr.bf16.mxu1 %v392_v3  ;;  %313 = vmatprep.mubr.msk.f32.mxu1 %vm393_vm0, %v394_v6  ;;  %v26_v8 = vld [vmem:[%s560_s1 + $0x20] sm:$0xff]  ;;  %v27_v9 = vld [vmem:[%s560_s1 + $0x28] sm:$0xff] }
   0x3   :  { %v320_v7 = vpack.c.bf16 %v25_v5, %v24_v2  ;;  %v110_v10 = vld [vmem:[%s562_s3] sm:$0xff]  ;;  %v111_v11 = vld [vmem:[%s562_s3 + $0x8] sm:$0xff]  ;;  %v112_v12 = vld [vmem:[%s562_s3 + $0x10] sm:$0xff]  ;;  %v323_v14 = vpack.c.bf16 %v27_v9, %v26_v8 }
   0x4   :  { %318 = vmatpush3.bf16.msra.mxu0 %v317_v4  ;;  %v113_v13 = vld [vmem:[%s562_s3 + $0x18] sm:$0xff]  ;;  %v341_v15 = vpack.c.bf16 %v111_v11, %v110_v10  ;;  %v28_v16 = vld [vmem:[%s560_s1 + $0x30] sm:$0xff]  ;;  %v114_v19 = vld [vmem:[%s562_s3 + $0x20] sm:$0xff] }
   0x5   :  { %319 = vmatprep.subr.bf16.mxu0 %v392_v3  ;;  %v29_v17 = vld [vmem:[%s560_s1 + $0x38] sm:$0xff]  ;;  %v344_v18 = vpack.c.bf16 %v113_v13, %v112_v12  ;;  %v115_v20 = vld [vmem:[%s562_s3 + $0x28] sm:$0xff] }
   0x6   :  { %342 = vmatpush3.bf16.msra.mxu1 %v341_v15 }
   0x7   :  { %343 = vmatprep.subr.bf16.mxu1 %v392_v3 }
   0x8   :  { %321 = vmatpush3.bf16.msra.mxu0 %v320_v7 }
   0x9   :  { %322 = vmatprep.subr.bf16.mxu0 %v392_v3 }
   0xa   :  { %10 = vsyncpa [#allocation3], 0  ;;  %v326_v21 = vpack.c.bf16 %v29_v17, %v28_v16  ;;  %v30_v22 = vld [vmem:[%s560_s1 + $0x40] sm:$0xff]  ;;  %v31_v23 = vld [vmem:[%s560_s1 + $0x48] sm:$0xff]  ;;  %345 = vmatpush3.bf16.msra.mxu1 %v344_v18  ;;  %v347_v24 = vpack.c.bf16 %v115_v20, %v114_v19  ;;  %s395_s11 = smov [#allocation2]  }
   0xb   :  { %346 = vmatprep.subr.bf16.mxu1 %v392_v3  ;;  %v116_v25 = vld [vmem:[%s562_s3 + $0x30] sm:$0xff]  ;;  %v117_v26 = vld [vmem:[%s562_s3 + $0x38] sm:$0xff]  ;;  %v329_v27 = vpack.c.bf16 %v31_v23, %v30_v22  ;;  %v118_v31 = vld [vmem:[%s562_s3 + $0x40] sm:$0xff]  ;;  %s204_s12 = sshll.u32 %s395_s11, 4  ;;  %s205_s12 = int_to_ptr.vmem [resolvable:$true] %s204_s12 }
   0xc   :  { %324 = vmatpush3.bf16.msra.mxu0 %v323_v14  ;;  %v32_v28 = vld [vmem:[%s560_s1 + $0x50] sm:$0xff]  ;;  %v33_v29 = vld [vmem:[%s560_s1 + $0x58] sm:$0xff]  ;;  %v350_v30 = vpack.c.bf16 %v117_v26, %v116_v25  ;;  %v119_v32 = vld [vmem:[%s562_s3 + $0x48] sm:$0xff]  ;;  %p373_p1 = scmp.lt.s32.totalorder %s205_s12, %s205_s12 }
   0xd   :  { %325 = vmatprep.subr.bf16.mxu0 %v392_v3  ;;  %v332_v33 = vpack.c.bf16 %v33_v29, %v32_v28  ;;  %v34_v34 = vld [vmem:[%s560_s1 + $0x60] sm:$0xff]  ;;  %v35_v35 = vld [vmem:[%s560_s1 + $0x68] sm:$0xff]  ;;  %v353_v36 = vpack.c.bf16 %v119_v32, %v118_v31  ;;  %v120_v37 = vld [vmem:[%s562_s3 + $0x50] sm:$0xff] }
   0xe   :  { %348 = vmatpush3.bf16.msra.mxu1 %v347_v24  ;;  %v121_v38 = vld [vmem:[%s562_s3 + $0x58] sm:$0xff]  ;;  %v335_v39 = vpack.c.bf16 %v35_v35, %v34_v34  ;;  %v36_v40 = vld [vmem:[%s560_s1 + $0x70] sm:$0xff]  ;;  %v122_v43 = vld [vmem:[%s562_s3 + $0x60] sm:$0xff] }
   0xf   :  { %349 = vmatprep.subr.bf16.mxu1 %v392_v3  ;;  %v37_v41 = vld [vmem:[%s560_s1 + $0x78] sm:$0xff]  ;;  %v356_v42 = vpack.c.bf16 %v121_v38, %v120_v37  ;;  %v123_v44 = vld [vmem:[%s562_s3 + $0x68] sm:$0xff]  ;;  %v21_v47 = vld [vmem:[%s559_s0] sm:$0xff] }
  0x10   :  { %327 = vmatpush3.bf16.msra.mxu0 %v326_v21  ;;  %v338_v45 = vpack.c.bf16 %v37_v41, %v36_v40  ;;  %v359_v46 = vpack.c.bf16 %v123_v44, %v122_v43  ;;  %v124_v48 = vld [vmem:[%s562_s3 + $0x70] sm:$0xff]  ;;  %v125_v49 = vld [vmem:[%s562_s3 + $0x78] sm:$0xff]  ;;  %v38_v51 = vld [vmem:[%s561_s2] sm:$0xff]  ;;  %s368_s3 = scalar_lea.vmem %s205_s12, 128 }
  0x11   :  { %328 = vmatprep.subr.bf16.mxu0 %v392_v3  ;;  %v362_v50 = vpack.c.bf16 %v125_v49, %v124_v48  ;;  %v126_v56 = vld [vmem:[%s563_s4] sm:$0xff]  ;;  %p369_p0 = scmp.ne.s32.totalorder %s205_s12, %s368_s3  ;;  %p374_p2 = scmp.lt.s32.totalorder %s368_s3, %s368_s3 }
  0x12   :  { %351 = vmatpush3.bf16.msra.mxu1 %v350_v30 }
  0x13   :  { %352 = vmatprep.subr.bf16.mxu1 %v392_v3  ;;  %p375_p3 = por %p374_p2, %p373_p1 }
  0x14   :  { %330 = vmatpush3.bf16.msra.mxu0 %v329_v27 }
  0x15   :  { %331 = vmatprep.subr.bf16.mxu0 %v392_v3  ;;  %p376_p4 = pnand %p375_p3, %p369_p0 }
  0x16   :  { %354 = vmatpush3.bf16.msra.mxu1 %v353_v36 }
  0x17   :  { %355 = vmatprep.subr.bf16.mxu1 %v392_v3 }
  0x18   :  { %333 = vmatpush3.bf16.msra.mxu0 %v332_v33 }
  0x19   :  { %334 = vmatprep.subr.bf16.mxu0 %v392_v3 }
  0x1a   :  { %357 = vmatpush3.bf16.msra.mxu1 %v356_v42 }
  0x1b   :  { %358 = vmatprep.subr.bf16.mxu1 %v392_v3 }
  0x1c   :  { %336 = vmatpush3.bf16.msra.mxu0 %v335_v39 }
  0x1d   :  { %337 = vmatprep.subr.bf16.mxu0 %v392_v3 }
  0x1e   :  { %360 = vmatpush3.bf16.msra.mxu1 %v359_v46 }
  0x1f   :  { %361 = vmatprep.subr.bf16.mxu1 %v392_v3 }
  0x20   :  { %339 = vmatpush3.bf16.msra.mxu0 %v338_v45 }
  0x22   :  { %363 = vmatpush3.bf16.msra.mxu1 %v362_v50 }
  0x23   :  { %279 = vmatmul.mubr.f32.vlgmr.msra.gmra.mrb[0].mxu0 %v21_v47 }
  0xf6   :  { %v105_v52 = vpop.f32.mrb[0].mxu0 }
  0xf7   :  { %v106_v53 = vadd.f32 %v105_v52, %v38_v51  ;;  %v280_v54 = vpop.f32.mrb[1].mxu0 }
  0xf9   :  { %v109_v55 = vmax.f32 %v106_v53, 0.0 }
  0xfb   :  { %314 = vmatmul.mubr.f32.vlgmr.msra.gmra.mrb[0].mxu1 %v109_v55 }
 0x1ce   :  { %v193_v57 = vpop.f32.mrb[0].mxu1 }
 0x1cf   :  { %v194_v58 = vadd.f32 %v193_v57, %v126_v56  ;;  %v315_v59 = vpop.f32.mrb[1].mxu1 }
 0x1d1   :  { %197 = vst [vmem:[#allocation2] sm:$0xff] %v194_v58 }
 0x1d2   :  { %379 = shalt.err (!%p376_p4)
}
 0x1d3   :  { %s380_s14 = scalar_lea.hbm %s564_s5, 128 }
 0x1d4   :  { %p381_p5 = scmp.ne.s32.totalorder %s564_s5, %s380_s14  ;;  %p384_p6 = scmp.lt.u32.totalorder %s380_s14, %s564_s5 }
 0x1d6   :  { %p386_p7 = pnand %p384_p6, %p381_p5 }
 0x1d8   :  { %389 = shalt.err (!%p386_p7)
}
 0x1d9   :  { %207 = dma.vmem_to_hbm [thread:$0]  %s205_s12, 128, %s564_s5, [#allocation3]  }
 0x1da   :  { %390 = dma.done.wait [#allocation3], 128  }
 0x1db   :  { %391 = vsyncadd [#allocation3], 4294967168 }
 0x1dc   :  { %211 = vsyncpa [#allocation3], 1 }

</bundles_post_ra>
